<compile_context>
chip_gen: v6e
topology: v6e:2x2x1
jax: 0.10.0
libtpu: 0.0.40
codegen_flags: <defaults>
</compile_context>

<pallas_src>
import jax
import jax.numpy as jnp
from jax.experimental import pallas as pl
from jax.experimental.pallas import tpu as pltpu

LANE = 128
SUBLANE = 8


def _round_up(x, m):
    return ((x + m - 1) // m) * m


def _pad_to(arr, shape):
    pads = [(0, s - d) for d, s in zip(arr.shape, shape)]
    if all(p == (0, 0) for p in pads):
        return arr
    return jnp.pad(arr, pads)


def _leaky_relu(x, slope=0.05):
    return jnp.where(x > 0, x, slope * x)


def _vmem_cap_bytes():
    """Physical VMEM of this generation minus headroom for Mosaic scratch."""
    phys = 64 << 20
    try:
        info = pltpu.get_tpu_info()
        phys = int(getattr(info, "vmem_capacity_bytes", phys))
    except Exception:
        pass
    return max(phys - (16 << 20), 32 << 20)


# --------------------------------------------------------------------------- #
# Parameter preparation (done once, not per forward call)
# --------------------------------------------------------------------------- #
def prepare_mlp_params(w1, b1, w2, b2, w3, b3, *, compute_dtype=jnp.bfloat16):
    """Pad hidden feature axes to lane multiples and cast weights to the MXU
    compute dtype ONCE.  The output width (num_o) is deliberately left
    unpadded so the final store writes only real bytes.

    w*: [fan_in, fan_out] (transpose of PyTorch layout), b*: [fan_out] or [1, fan_out].
    """
    num_i, num_h1 = w1.shape
    num_h2 = w2.shape[1]
    num_o = w3.shape[1]
    ph1 = _round_up(num_h1, LANE)
    ph2 = _round_up(num_h2, LANE)

    w1p = _pad_to(w1, (num_i, ph1)).astype(compute_dtype)
    w2p = _pad_to(w2, (ph1, ph2)).astype(compute_dtype)
    w3p = _pad_to(w3, (ph2, num_o)).astype(compute_dtype)
    # Biases stay f32 (bias add + LeakyReLU run in f32 on the VPU).
    b1p = _pad_to(jnp.reshape(b1, (1, -1)), (1, ph1)).astype(jnp.float32)
    b2p = _pad_to(jnp.reshape(b2, (1, -1)), (1, ph2)).astype(jnp.float32)
    b3p = jnp.reshape(b3, (1, -1)).astype(jnp.float32)
    return (w1p, b1p, w2p, b2p, w3p, b3p)


# --------------------------------------------------------------------------- #
# Kernel: one batch tile per grid step, all three matmuls + activations fused
# --------------------------------------------------------------------------- #
def mlp_kernel(x_ref, w1_ref, b1_ref, w2_ref, b2_ref, w3_ref, b3_ref, o_ref):
    # In-kernel cast to the MXU dtype: x never makes an extra HBM round trip.
    x = x_ref[...].astype(w1_ref.dtype)                       # (bm, num_i)
    h1 = jnp.dot(x, w1_ref[...], preferred_element_type=jnp.float32) + b1_ref[...]
    h1 = _leaky_relu(h1)
    h2 = jnp.dot(h1.astype(w2_ref.dtype), w2_ref[...],
                 preferred_element_type=jnp.float32) + b2_ref[...]
    h2 = _leaky_relu(h2)
    o = jnp.dot(h2.astype(w3_ref.dtype), w3_ref[...],
                preferred_element_type=jnp.float32) + b3_ref[...]
    o_ref[...] = o.astype(o_ref.dtype)                        # (bm, num_o) real width


# --------------------------------------------------------------------------- #
# Wrapper
# --------------------------------------------------------------------------- #
def mlp_forward(x, params, *, bm=None, out_dtype=jnp.float32):
    """x: [B, num_i] (f32); params: output of prepare_mlp_params()."""
    w1p, b1p, w2p, b2p, w3p, b3p = params
    B, num_i = x.shape
    assert num_i == w1p.shape[0], "x feature width must match w1 fan_in"
    ph1, ph2, num_o = w1p.shape[1], w2p.shape[1], w3p.shape[1]

    # Batch tile: aim for >= 2 grid steps when B allows (v7x's two TensorCores
    # split the "parallel" axis; also gives the pipeliner something to overlap),
    # capped at 512 rows so the f32 out tile stays small and awkward batch
    # sizes never round up by a whole tile's worth of wasted rows.
    if bm is None:
        half = _round_up(pl.cdiv(B, 2), SUBLANE)
        bm = max(SUBLANE, min(512, half))
    bm = max(SUBLANE, _round_up(bm, SUBLANE))
    grid = (pl.cdiv(B, bm),)

    # Scheduling hint for XLA.
    flops = 2 * B * (num_i * ph1 + ph1 * ph2 + ph2 * num_o)
    bytes_accessed = (
        x.size * x.dtype.itemsize
        + sum(a.size * a.dtype.itemsize for a in params)
        + B * num_o * jnp.dtype(out_dtype).itemsize
    )
    cost = pl.CostEstimate(flops=flops, transcendentals=0,
                           bytes_accessed=bytes_accessed)

    # VMEM budget: resident weights + double-buffered x/out tiles + intermediates.
    weight_bytes = sum(a.size * a.dtype.itemsize for a in params)
    tile_bytes = (2 * bm * num_i * x.dtype.itemsize
                  + 2 * bm * num_o * jnp.dtype(out_dtype).itemsize)
    interm_bytes = 2 * bm * (ph1 + ph2) * 4
    needed = weight_bytes + tile_bytes + interm_bytes + (4 << 20)
    vmem_limit = int(min(max(needed, 32 << 20), _vmem_cap_bytes()))

    # Weights / biases: loaded once, held resident in VMEM (no per-step DMA).
    resident = pl.BlockSpec(memory_space=pltpu.MemorySpace.VMEM)

    x_spec = pl.BlockSpec((bm, num_i), lambda i: (i, 0))
    out_spec = pl.BlockSpec((bm, num_o), lambda i: (i, 0))
    if grid[0] == 1:
        # Nothing to pipeline with a single step: drop the second buffer.
        x_spec = pl.BlockSpec((bm, num_i), lambda i: (i, 0),
                              pipeline_mode=pl.Buffered(1))
        out_spec = pl.BlockSpec((bm, num_o), lambda i: (i, 0),
                                pipeline_mode=pl.Buffered(1))

    return pl.pallas_call(
        mlp_kernel,
        out_shape=jax.ShapeDtypeStruct((B, num_o), out_dtype),
        grid_spec=pltpu.PrefetchScalarGridSpec(
            num_scalar_prefetch=0,
            grid=grid,
            in_specs=[
                x_spec,     # x tile (f32, cast to bf16 in-kernel)
                resident,   # W1
                resident,   # b1
                resident,   # W2
                resident,   # b2
                resident,   # W3
                resident,   # b3
            ],
            out_specs=out_spec,
        ),
        compiler_params=pltpu.CompilerParams(
            dimension_semantics=("parallel",),
            vmem_limit_bytes=vmem_limit,
        ),
        cost_estimate=cost,
    )(x, w1p, b1p, w2p, b2p, w3p, b3p)


# --------------------------------------------------------------------------- #
# Reference & init
# --------------------------------------------------------------------------- #
def init_linear_params(key, fan_in, fan_out):
    # PyTorch nn.Linear default init: U(-1/sqrt(fan_in), 1/sqrt(fan_in)).
    kw, kb = jax.random.split(key)
    bound = 1.0 / jnp.sqrt(fan_in)
    # Stored as [fan_in, fan_out] (transpose of PyTorch layout) for x @ W.
    w = jax.random.uniform(kw, (fan_in, fan_out), jnp.float32, -bound, bound)
    b = jax.random.uniform(kb, (1, fan_out), jnp.float32, -bound, bound)
    return w, b


def mlp_reference(x, w1, b1, w2, b2, w3, b3):
    h1 = _leaky_relu(x @ w1 + b1)
    h2 = _leaky_relu(h1 @ w2 + b2)
    return h2 @ w3 + b3


if __name__ == "__main__":
    # Small shapes implied by the module: num_i=32, num_h1=64, num_h2=64, num_o=16.
    B, num_i, num_h1, num_h2, num_o = 16, 32, 64, 64, 16

    key = jax.random.PRNGKey(0)
    kx, k1, k2, k3 = jax.random.split(key, 4)

    x = jax.random.normal(kx, (B, num_i), jnp.float32)
    w1, b1 = init_linear_params(k1, num_i, num_h1)
    w2, b2 = init_linear_params(k2, num_h1, num_h2)
    w3, b3 = init_linear_params(k3, num_h2, num_o)

    ref = mlp_reference(x, w1, b1, w2, b2, w3, b3)

    # f32 validation path: tight check against the reference.
    params_f32 = prepare_mlp_params(w1, b1, w2, b2, w3, b3,
                                    compute_dtype=jnp.float32)
    out_f32 = jax.block_until_ready(mlp_forward(x, params_f32))
    assert out_f32.shape == (B, num_o)
    assert jnp.allclose(out_f32, ref, atol=1e-5, rtol=1e-5), "f32 mismatch vs reference"

    # bf16-MXU production path: pad/cast weights once, reuse across calls.
    params = prepare_mlp_params(w1, b1, w2, b2, w3, b3)
    out = jax.block_until_ready(mlp_forward(x, params))
    assert out.shape == (B, num_o)
    assert jnp.allclose(out, ref, atol=5e-2, rtol=5e-2), "bf16 mismatch vs reference"

    print("KERNEL_OK")
</pallas_src>

<mosaic_0001>
module attributes {stable_mosaic.version = 11 : i64} {
  func.func @mlp_kernel(%arg0: i32, %arg1: memref<8x32xf32, #tpu.memory_space<vmem>>, %arg2: memref<32x128xf32, #tpu.memory_space<vmem>>, %arg3: memref<1x128xf32, #tpu.memory_space<vmem>>, %arg4: memref<128x128xf32, #tpu.memory_space<vmem>>, %arg5: memref<1x128xf32, #tpu.memory_space<vmem>>, %arg6: memref<128x16xf32, #tpu.memory_space<vmem>>, %arg7: memref<1x16xf32, #tpu.memory_space<vmem>>, %arg8: memref<8x16xf32, #tpu.memory_space<vmem>>) attributes {dimension_semantics = [#tpu.dimension_semantics<parallel>], iteration_bounds = array<i64: 2>, scalar_prefetch = 0 : i64, scratch_operands = 0 : i64, tpu.core_type = #tpu.core_type<tc>, window_params = [{transform_indices = @transform_0, window_bounds = array<i64: 8, 32>}, {pipeline_mode = #tpu.pipeline_mode<synchronous>, transform_indices = @transform_1, window_bounds = array<i64: 32, 128>}, {pipeline_mode = #tpu.pipeline_mode<synchronous>, transform_indices = @transform_2, window_bounds = array<i64: 1, 128>}, {pipeline_mode = #tpu.pipeline_mode<synchronous>, transform_indices = @transform_3, window_bounds = array<i64: 128, 128>}, {pipeline_mode = #tpu.pipeline_mode<synchronous>, transform_indices = @transform_4, window_bounds = array<i64: 1, 128>}, {pipeline_mode = #tpu.pipeline_mode<synchronous>, transform_indices = @transform_5, window_bounds = array<i64: 128, 16>}, {pipeline_mode = #tpu.pipeline_mode<synchronous>, transform_indices = @transform_6, window_bounds = array<i64: 1, 16>}, {transform_indices = @transform_7, window_bounds = array<i64: 8, 16>}]} {
    %c0 = arith.constant 0 : index
    %c0_0 = arith.constant 0 : index
    %0 = vector.load %arg1[%c0, %c0_0] : memref<8x32xf32, #tpu.memory_space<vmem>>, vector<8x32xf32>
    %c0_1 = arith.constant 0 : index
    %c0_2 = arith.constant 0 : index
    %1 = vector.load %arg2[%c0_1, %c0_2] : memref<32x128xf32, #tpu.memory_space<vmem>>, vector<32x128xf32>
    %cst = arith.constant dense<0.000000e+00> : vector<8x128xf32>
    %2 = tpu.matmul %0, %1, %cst {dimension_numbers = #tpu.dot_dimension_numbers<[1], [0], [0], [1], [0, 0, 1, 1], [], []>} : vector<8x32xf32>, vector<32x128xf32>, vector<8x128xf32> -> vector<8x128xf32>
    %c0_3 = arith.constant 0 : index
    %c0_4 = arith.constant 0 : index
    %3 = vector.load %arg3[%c0_3, %c0_4] : memref<1x128xf32, #tpu.memory_space<vmem>>, vector<1x128xf32>
    %4 = vector.broadcast %3 : vector<1x128xf32> to vector<8x128xf32>
    %5 = arith.addf %2, %4 : vector<8x128xf32>
    %cst_5 = arith.constant 0.000000e+00 : f32
    %6 = vector.broadcast %cst_5 : f32 to vector<8x128xf32>
    %7 = arith.cmpf ogt, %5, %6 : vector<8x128xf32>
    %cst_6 = arith.constant 5.000000e-02 : f32
    %8 = vector.broadcast %cst_6 : f32 to vector<8x128xf32>
    %9 = arith.mulf %8, %5 : vector<8x128xf32>
    %10 = arith.select %7, %5, %9 : vector<8x128xi1>, vector<8x128xf32>
    %c0_7 = arith.constant 0 : index
    %c0_8 = arith.constant 0 : index
    %11 = vector.load %arg4[%c0_7, %c0_8] : memref<128x128xf32, #tpu.memory_space<vmem>>, vector<128x128xf32>
    %cst_9 = arith.constant dense<0.000000e+00> : vector<8x128xf32>
    %12 = tpu.matmul %10, %11, %cst_9 {dimension_numbers = #tpu.dot_dimension_numbers<[1], [0], [0], [1], [0, 0, 1, 1], [], []>} : vector<8x128xf32>, vector<128x128xf32>, vector<8x128xf32> -> vector<8x128xf32>
    %c0_10 = arith.constant 0 : index
    %c0_11 = arith.constant 0 : index
    %13 = vector.load %arg5[%c0_10, %c0_11] : memref<1x128xf32, #tpu.memory_space<vmem>>, vector<1x128xf32>
    %14 = vector.broadcast %13 : vector<1x128xf32> to vector<8x128xf32>
    %15 = arith.addf %12, %14 : vector<8x128xf32>
    %cst_12 = arith.constant 0.000000e+00 : f32
    %16 = vector.broadcast %cst_12 : f32 to vector<8x128xf32>
    %17 = arith.cmpf ogt, %15, %16 : vector<8x128xf32>
    %cst_13 = arith.constant 5.000000e-02 : f32
    %18 = vector.broadcast %cst_13 : f32 to vector<8x128xf32>
    %19 = arith.mulf %18, %15 : vector<8x128xf32>
    %20 = arith.select %17, %15, %19 : vector<8x128xi1>, vector<8x128xf32>
    %c0_14 = arith.constant 0 : index
    %c0_15 = arith.constant 0 : index
    %21 = vector.load %arg6[%c0_14, %c0_15] : memref<128x16xf32, #tpu.memory_space<vmem>>, vector<128x16xf32>
    %cst_16 = arith.constant dense<0.000000e+00> : vector<8x16xf32>
    %22 = tpu.matmul %20, %21, %cst_16 {dimension_numbers = #tpu.dot_dimension_numbers<[1], [0], [0], [1], [0, 0, 1, 1], [], []>} : vector<8x128xf32>, vector<128x16xf32>, vector<8x16xf32> -> vector<8x16xf32>
    %c0_17 = arith.constant 0 : index
    %c0_18 = arith.constant 0 : index
    %23 = vector.load %arg7[%c0_17, %c0_18] : memref<1x16xf32, #tpu.memory_space<vmem>>, vector<1x16xf32>
    %24 = vector.broadcast %23 : vector<1x16xf32> to vector<8x16xf32>
    %25 = arith.addf %22, %24 : vector<8x16xf32>
    %c0_19 = arith.constant 0 : index
    %c0_20 = arith.constant 0 : index
    %26 = vector.load %arg8[%c0_19, %c0_20] : memref<8x16xf32, #tpu.memory_space<vmem>>, vector<8x16xf32>
    tpu.vector_store %arg8[%c0_19, %c0_20], %25 {strides = array<i32>} : memref<8x16xf32, #tpu.memory_space<vmem>>, vector<8x16xf32>,
    return
  }
  func.func @transform_0(%arg0: i32) -> (i32, i32) {
    %c0_i32 = arith.constant 0 : i32
    %c0_i32_0 = arith.constant 0 : i32
    return %arg0, %c0_i32 : i32, i32
  }
  func.func @transform_1(%arg0: i32) -> (i32, i32) {
    %c0_i32 = arith.constant 0 : i32
    %c0_i32_0 = arith.constant 0 : i32
    %c0_i32_1 = arith.constant 0 : i32
    return %c0_i32, %c0_i32_0 : i32, i32
  }
  func.func @transform_2(%arg0: i32) -> (i32, i32) {
    %c0_i32 = arith.constant 0 : i32
    %c0_i32_0 = arith.constant 0 : i32
    %c0_i32_1 = arith.constant 0 : i32
    return %c0_i32, %c0_i32_0 : i32, i32
  }
  func.func @transform_3(%arg0: i32) -> (i32, i32) {
    %c0_i32 = arith.constant 0 : i32
    %c0_i32_0 = arith.constant 0 : i32
    %c0_i32_1 = arith.constant 0 : i32
    return %c0_i32, %c0_i32_0 : i32, i32
  }
  func.func @transform_4(%arg0: i32) -> (i32, i32) {
    %c0_i32 = arith.constant 0 : i32
    %c0_i32_0 = arith.constant 0 : i32
    %c0_i32_1 = arith.constant 0 : i32
    return %c0_i32, %c0_i32_0 : i32, i32
  }
  func.func @transform_5(%arg0: i32) -> (i32, i32) {
    %c0_i32 = arith.constant 0 : i32
    %c0_i32_0 = arith.constant 0 : i32
    %c0_i32_1 = arith.constant 0 : i32
    return %c0_i32, %c0_i32_0 : i32, i32
  }
  func.func @transform_6(%arg0: i32) -> (i32, i32) {
    %c0_i32 = arith.constant 0 : i32
    %c0_i32_0 = arith.constant 0 : i32
    %c0_i32_1 = arith.constant 0 : i32
    return %c0_i32, %c0_i32_0 : i32, i32
  }
  func.func @transform_7(%arg0: i32) -> (i32, i32) {
    %c0_i32 = arith.constant 0 : i32
    %c0_i32_0 = arith.constant 0 : i32
    return %arg0, %c0_i32 : i32, i32
  }
}

</mosaic_0001>

<bundles_post_ra>
// kernel: tpu_custom_call.1
= control target key start
LH: loop header
LB: loop body
LE: loop exit
PB: predicated region body
PF: predicated region fallthrough
CT: control target
= control target key end

     0   :  { %12 = vsyncpa [#allocation3], 0  ;;  %s1240_s0 = inlined_call_operand.vmem [shape: f32[16,32], index: 0, kind: input, shape index: {}]   ;;  %s1241_s1 = inlined_call_operand.hbm [shape: f32[32,128], index: 1, kind: input, shape index: {}]   ;;  %s1242_s2 = inlined_call_operand.vmem [shape: f32[1,128], index: 2, kind: input, shape index: {}]   ;;  %s1243_s3 = inlined_call_operand.vmem [shape: f32[128,128], index: 3, kind: input, shape index: {}]   ;;  %s1244_s4 = inlined_call_operand.vmem [shape: f32[1,128], index: 4, kind: input, shape index: {}]   ;;  %s1245_s5 = inlined_call_operand.vmem [shape: f32[128,16], index: 5, kind: input, shape index: {}]   ;;  %s1246_s6 = inlined_call_operand.vmem [shape: f32[1,16], index: 6, kind: input, shape index: {}]   ;;  %s1247_s7 = inlined_call_operand.hbm [shape: f32[16,16], index: 7, kind: output, shape index: {}]  }
   0x1   :  { %13 = vsyncpa [#allocation4], 0 }
   0x2   :  { %15 = vsyncpa [#allocation4 + $0x1], 0  ;;  %s982_s24 = smov 0   ;;  %s984_s25 = smov 0  }
   0x3   :  { %s986_s26 = smov 0   ;;  %s988_s27 = smov 0  }
   0x4 LB: > { %s1003_s28 = sadd.s32 4294967295, %s934_s27   ;;  %s654_s29 = sadd.s32 4294967294, %s934_s27   ;;  %s934_s27 = sphi %s988_s27, %s1255_s27   ;;  %s930_s26 = sphi %s986_s26, %s1254_s26   ;;  %s926_s25 = sphi %s984_s25, %s1253_s25   ;;  %s922_s24 = sphi %s982_s24, %s1252_s24  }
   0x5   : > { %s1007_s30 = sadd.s32 1, %s934_s27   ;;  %s180_s8 = sadd.s32 1, %s930_s26 }
   0x6   : > { %s177_s9 = ssub.s32 %s934_s27, %s1007_s30  ;;  %p190_p0 = scmp.ne.s32.totalorder %s930_s26, %s926_s25 }
   0x7   : > { %p178_p1 = scmp.eq.s32.totalorder %s177_s9, 0  ;;  %p191_p2 = scmp.eq.s32.totalorder %s1003_s28, 1 }
   0x8   : > { %p196_p3 = scmp.ne.s32.totalorder %s926_s25, %s922_s24  ;;  %p197_p4 = scmp.eq.s32.totalorder %s654_s29, 1 }
   0x9   : > { %s1018_s10 = scalar_select %p178_p1, %s930_s26, %s180_s8  }
   0xa   : > { %p1020_p5 = por %p191_p2, %p190_p0  ;;  %p1024_p6 = por %p197_p4, %p196_p3 }
   0xb   : > { %p655_p7 = scmp.ge.s32.totalorder %s934_s27, 1  ;;  %p204_p8 = scmp.lt.s32.totalorder %s934_s27, 3 }
   0xc   : > { %s1249_s12 = scalar_select %p1024_p6, 1, 0 }
   0xd   : > { %p804_p9 = scmp.eq.s32.totalorder %s1003_s28, 0  ;;  %p1031_p10 = pnand %p655_p7, %p204_p8 }
   0xe   : > { %s936_s14 = smov [#allocation2]  }
   0xf   : > { %s216_s15 = sshll.u32 %s936_s14, 4  ;;  %p796_p11 = pneg %p1031_p10  ;;  %s217_s15 = int_to_ptr.vmem [resolvable:$true] %s216_s15 }
  0x10   : > { %s855_s16 = scalar_lea.vmem %s217_s15, 512  ;;  %p863_p3 = scmp.lt.s32.totalorder %s217_s15, %s217_s15 }
  0x11   : > { %p797_p12 = pnand %p804_p9, %p796_p11  ;;  %p856_p0 = scmp.ne.s32.totalorder %s217_s15, %s855_s16 }
  0x12   : > { %p864_p4 = scmp.lt.s32.totalorder %s855_s16, %s855_s16 }
  0x13   : > { %p846_p13 = pneg %p797_p12 }
  0x14   : > { %p865_p6 = por %p864_p4, %p863_p3 }
  0x15   : > { %p858_p1 = pnand %p856_p0, %p846_p13 }
  0x17   : > { %p859_p2 = pneg %p858_p1 }
  0x19   : > { %p866_p7 = pnand %p865_p6, %p859_p2 }
  0x1b   : > { %869 = shalt.err (!%p866_p7)
}
  0x1c   : > { %s937_s17 = smov 128   ;;  %s938_s18 = smov 8  }
  0x1d   : > { %799 = dma.hbm_to_vmem [thread:$0]  (!%p797_p12), %s1241_s1, 512, %s217_s15, [#allocation3], %s937_s17, %s937_s17, %s938_s18  }
  0x1e   : > { %254 = sbr.rel (%p1031_p10) target bundleno = 650 (0x28a), region = 48 }
  0x23   : > { %913 = dma.done.wait (%p804_p9), [#allocation3], 512  }
  0x24   : > { %915 = vsyncadd (%p804_p9), [#allocation3], 4294966784  ;;  %p285_p8 = scmp.lt.s32.totalorder %s1003_s28, 1  ;;  %v939_v0 = vmov 0.0   ;;  %vm940_vm0 = vmmov 0   ;;  %v293_v1 = vld [vmem:[#allocation2 + $0x18] sm:$0xff] }
  0x25   : > { %709 = vmatprep.subr.mxu0 %v939_v0  ;;  %717 = vmatprep.mubr.msk.f32.mxu0 %vm940_vm0, %v939_v0  ;;  %v292_v2 = vld [vmem:[#allocation2 + $0x10] sm:$0xff]  ;;  %v393_v3 = vld [vmem:[%s1243_s3 + $0x78] sm:$0xff]  ;;  %v291_v4 = vld [vmem:[#allocation2 + $0x8] sm:$0xff]  ;;  %vm301_vm1 = vcmask 261120   ;;  %s282_s29 = sand.u32 1, %s926_s25   ;;  %s667_s14 = sshll.u32 %s1003_s28, 7 }
  0x26   : > { %s286_s21 = scalar_select %p285_p8, %s1003_s28, 1  ;;  %720 = vmatprep.subr.mxu1 %v939_v0  ;;  %752 = vmatprep.mubr.msk.f32.mxu1 %vm940_vm0, %v939_v0  ;;  %v392_v5 = vld [vmem:[%s1243_s3 + $0x70] sm:$0xff]  ;;  %v391_v6 = vld [vmem:[%s1243_s3 + $0x68] sm:$0xff]  ;;  %v290_v7 = vld [vmem:[#allocation2] sm:$0xff]  ;;  %vm567_vm4 = vcmask 130048  }
  0x27   : > { %710 = vmatpush3.msra.mxu0 %v293_v1  ;;  %721 = vmatpush3.msra.mxu1 %v393_v3  ;;  %v390_v9 = vld [vmem:[%s1243_s3 + $0x60] sm:$0xff]  ;;  %v389_v10 = vld [vmem:[%s1243_s3 + $0x58] sm:$0xff]  ;;  %v388_v11 = vld [vmem:[%s1243_s3 + $0x50] sm:$0xff]  ;;  %s660_s8 = sshll.u32 %s282_s29, 3  ;;  %s1205_s19 = scalar_lea.hbm %s1247_s7, %s667_s14 }
  0x28   : > { %s661_s22 = sshll.u32 %s286_s21, 3  ;;  %711 = vmatprep.subr.mxu0 %v939_v0  ;;  %722 = vmatprep.subr.mxu1 %v939_v0  ;;  %v387_v12 = vld [vmem:[%s1243_s3 + $0x48] sm:$0xff]  ;;  %v386_v13 = vld [vmem:[%s1243_s3 + $0x40] sm:$0xff]  ;;  %v385_v14 = vld [vmem:[%s1243_s3 + $0x38] sm:$0xff]  ;;  %s284_s15 = scalar_lea.vmem [#allocation5], %s660_s8 }
  0x29   : > { %s288_s13 = scalar_lea.vmem %s1240_s0, %s661_s22  ;;  %712 = vmatpush3.msra.mxu0 %v292_v2  ;;  %723 = vmatpush3.msra.mxu1 %v392_v5  ;;  %v384_v15 = vld [vmem:[%s1243_s3 + $0x30] sm:$0xff]  ;;  %v383_v16 = vld [vmem:[%s1243_s3 + $0x28] sm:$0xff]  ;;  %v382_v17 = vld [vmem:[%s1243_s3 + $0x20] sm:$0xff]  ;;  %s583_s16 = sshll.u32 %s284_s15, 4  ;;  %s584_s16 = int_to_ptr.vmem [resolvable:$true] %s583_s16 }
  0x2a   : > { %713 = vmatprep.subr.mxu0 %v939_v0  ;;  %v289_v8 = vld [vmem:[%s288_s13] sm:$0xff]  ;;  %724 = vmatprep.subr.mxu1 %v939_v0  ;;  %v381_v18 = vld [vmem:[%s1243_s3 + $0x18] sm:$0xff]  ;;  %v380_v19 = vld [vmem:[%s1243_s3 + $0x10] sm:$0xff]  ;;  %s570_s20 = scalar_lea.sflag [#allocation4], %s282_s29  ;;  %s870_s21 = scalar_lea.vmem %s584_s16, 128 }
  0x2b   : > { %714 = vmatpush3.msra.mxu0 %v291_v4  ;;  %725 = vmatpush3.msra.mxu1 %v391_v6  ;;  %v379_v20 = vld [vmem:[%s1243_s3 + $0x8] sm:$0xff]  ;;  %v378_v21 = vld [vmem:[%s1243_s3] sm:$0xff]  ;;  %v489_v22 = vld [vmem:[%s1245_s5 + $0x78] sm:$0xff]  ;;  %p871_p6 = scmp.ne.s32.totalorder %s584_s16, %s870_s21  ;;  %s941_s28 = smov [#allocation5]  }
  0x2c   : > { %715 = vmatprep.subr.mxu0 %v939_v0  ;;  %726 = vmatprep.subr.mxu1 %v939_v0  ;;  %v488_v23 = vld [vmem:[%s1245_s5 + $0x70] sm:$0xff]  ;;  %v487_v24 = vld [vmem:[%s1245_s5 + $0x68] sm:$0xff]  ;;  %v486_v25 = vld [vmem:[%s1245_s5 + $0x60] sm:$0xff]  ;;  %s874_s22 = sshll.u32 %s941_s28, 4  ;;  %s875_s22 = int_to_ptr.vmem [resolvable:$false] %s874_s22 }
  0x2d   : > { %716 = vmatpush3.msra.mxu0 %v290_v7  ;;  %727 = vmatpush3.msra.mxu1 %v390_v9  ;;  %v485_v26 = vld [vmem:[%s1245_s5 + $0x58] sm:$0xff]  ;;  %v484_v27 = vld [vmem:[%s1245_s5 + $0x50] sm:$0xff]  ;;  %v483_v28 = vld [vmem:[%s1245_s5 + $0x48] sm:$0xff]  ;;  %p872_p9 = pnand %p871_p6, %p1020_p5  ;;  %s876_s23 = scalar_lea.vmem %s875_s22, 256 }
  0x2e   : > { %718 = vmatmul.mubr.msk.f32.vlgmr.msra.gmra.mxu0 %vm301_vm1, %v289_v8  ;;  %728 = vmatprep.subr.mxu1 %v939_v0  ;;  %v482_v29 = vld [vmem:[%s1245_s5 + $0x40] sm:$0xff]  ;;  %v481_v30 = vld [vmem:[%s1245_s5 + $0x38] sm:$0xff]  ;;  %v480_v31 = vld [vmem:[%s1245_s5 + $0x30] sm:$0xff]  ;;  %p877_p11 = scmp.lt.s32.totalorder %s584_s16, %s875_s22  ;;  %p878_p12 = scmp.lt.s32.totalorder %s876_s23, %s870_s21 }
  0x2f   : > { %755 = vmatprep.subr.mxu0 %v939_v0  ;;  %729 = vmatpush3.msra.mxu1 %v389_v10  ;;  %v479_v32 = vld [vmem:[%s1245_s5 + $0x28] sm:$0xff]  ;;  %v478_v33 = vld [vmem:[%s1245_s5 + $0x20] sm:$0xff]  ;;  %v477_v34 = vld [vmem:[%s1245_s5 + $0x18] sm:$0xff]  ;;  %p873_p10 = pneg %p872_p9 }
  0x30   : > { %787 = vmatprep.mubr.msk.f32.mxu0 %vm940_vm0, %v939_v0  ;;  %730 = vmatprep.subr.mxu1 %v939_v0  ;;  %v662_v35 = vld [vmem:[%s1242_s2] ss:$0 sm:$0xff]  ;;  %v476_v41 = vld [vmem:[%s1245_s5 + $0x10] sm:$0xff]  ;;  %v475_v42 = vld [vmem:[%s1245_s5 + $0x8] sm:$0xff]  ;;  %p879_p13 = por %p878_p12, %p877_p11 }
  0x31   : > { %731 = vmatpush3.msra.mxu1 %v388_v11  ;;  %756 = vmatpush3.msra.mxu0 %v489_v22  ;;  %v474_v43 = vld [vmem:[%s1245_s5] sm:$0xff] }
  0x32   : > { %732 = vmatprep.subr.mxu1 %v939_v0  ;;  %757 = vmatprep.subr.mxu0 %v939_v0  ;;  %v664_v44 = vld [vmem:[%s1244_s4] ss:$0 sm:$0xff]  ;;  %p880_p0 = pnand %p879_p13, %p873_p10 }
  0x33   : > { %733 = vmatpush3.msra.mxu1 %v387_v12  ;;  %758 = vmatpush3.msra.mxu0 %v488_v23  ;;  %v665_v50 = vld [vmem:[%s1246_s6] ss:$0 sm:$0xff] }
  0x34   : > { %734 = vmatprep.subr.mxu1 %v939_v0  ;;  %759 = vmatprep.subr.mxu0 %v939_v0 }
  0x35   : > { %735 = vmatpush3.msra.mxu1 %v386_v13  ;;  %760 = vmatpush3.msra.mxu0 %v487_v24 }
  0x36   : > { %736 = vmatprep.subr.mxu1 %v939_v0  ;;  %761 = vmatprep.subr.mxu0 %v939_v0 }
  0x37   : > { %737 = vmatpush3.msra.mxu1 %v385_v14  ;;  %762 = vmatpush3.msra.mxu0 %v486_v25 }
  0x38   : > { %738 = vmatprep.subr.mxu1 %v939_v0  ;;  %763 = vmatprep.subr.mxu0 %v939_v0 }
  0x39   : > { %739 = vmatpush3.msra.mxu1 %v384_v15  ;;  %764 = vmatpush3.msra.mxu0 %v485_v26 }
  0x3a   : > { %740 = vmatprep.subr.mxu1 %v939_v0  ;;  %765 = vmatprep.subr.mxu0 %v939_v0 }
  0x3b   : > { %741 = vmatpush3.msra.mxu1 %v383_v16  ;;  %766 = vmatpush3.msra.mxu0 %v484_v27 }
  0x3c   : > { %742 = vmatprep.subr.mxu1 %v939_v0  ;;  %767 = vmatprep.subr.mxu0 %v939_v0 }
  0x3d   : > { %743 = vmatpush3.msra.mxu1 %v382_v17  ;;  %768 = vmatpush3.msra.mxu0 %v483_v28 }
  0x3e   : > { %744 = vmatprep.subr.mxu1 %v939_v0  ;;  %769 = vmatprep.subr.mxu0 %v939_v0 }
  0x3f   : > { %745 = vmatpush3.msra.mxu1 %v381_v18  ;;  %770 = vmatpush3.msra.mxu0 %v482_v29 }
  0x40   : > { %746 = vmatprep.subr.mxu1 %v939_v0  ;;  %771 = vmatprep.subr.mxu0 %v939_v0 }
  0x41   : > { %747 = vmatpush3.msra.mxu1 %v380_v19  ;;  %772 = vmatpush3.msra.mxu0 %v481_v30 }
  0x42   : > { %748 = vmatprep.subr.mxu1 %v939_v0  ;;  %773 = vmatprep.subr.mxu0 %v939_v0 }
  0x43   : > { %749 = vmatpush3.msra.mxu1 %v379_v20  ;;  %774 = vmatpush3.msra.mxu0 %v480_v31 }
  0x44   : > { %750 = vmatprep.subr.mxu1 %v939_v0  ;;  %775 = vmatprep.subr.mxu0 %v939_v0 }
  0x45   : > { %751 = vmatpush3.msra.mxu1 %v378_v21  ;;  %776 = vmatpush3.msra.mxu0 %v479_v32 }
  0x46   : > { %777 = vmatprep.subr.mxu0 %v939_v0 }
  0x47   : > { %778 = vmatpush3.msra.mxu0 %v478_v33 }
  0x48   : > { %779 = vmatprep.subr.mxu0 %v939_v0 }
  0x49   : > { %780 = vmatpush3.msra.mxu0 %v477_v34 }
  0x4a   : > { %781 = vmatprep.subr.mxu0 %v939_v0 }
  0x4b   : > { %782 = vmatpush3.msra.mxu0 %v476_v41 }
  0x4c   : > { %783 = vmatprep.subr.mxu0 %v939_v0 }
  0x4d   : > { %784 = vmatpush3.msra.mxu0 %v475_v42 }
  0x4e   : > { %785 = vmatprep.subr.mxu0 %v939_v0 }
  0x4f   : > { %786 = vmatpush3.msra.mxu0 %v474_v43 }
  0xee   : > { %v371_v36 = vpop.f32.mrf.mxu0 }
  0xef   : > { %v372_v37 = vadd.f32 %v662_v35, %v371_v36 }
  0xf0   : > { %v719_v38 = vpop.f32.mrf.mxu0 }
  0xf1   : > { %v376_v39 = vmul.f32 0.05, %v372_v37  ;;  %vm375_vm2 = vcmp.gt.f32.partialorder %v372_v37, 0.0 }
  0xf3   : > { %v377_v40 = vsel %vm375_vm2, %v372_v37, %v376_v39 }
  0xf4   : > { %753 = vmatmul.mubr.f32.vlgmr.msra.gmra.mxu1 %v377_v40 }
 0x1b4   : > { %v467_v45 = vpop.f32.mrf.mxu1 }
 0x1b5   : > { %v468_v46 = vadd.f32 %v664_v44, %v467_v45 }
 0x1b6   : > { %v754_v47 = vpop.f32.mrf.mxu1 }
 0x1b7   : > { %vm471_vm3 = vcmp.gt.f32.partialorder %v468_v46, 0.0  ;;  %v472_v48 = vmul.f32 0.05, %v468_v46 }
 0x1b9   : > { %v473_v49 = vsel %vm471_vm3, %v468_v46, %v472_v48 }
 0x1ba   : > { %788 = vmatmul.mubr.f32.vlgmr.msra.gmra.mxu0 %v473_v49 }
 0x27a   : > { %v563_v51 = vpop.f32.mrf.mxu0 }
 0x27b   : > { %v564_v52 = vadd.f32 %v665_v50, %v563_v51 }
 0x27c   : > { %v789_v53 = vpop.f32.mrf.mxu0 }
 0x27d   : > { %568 = vst.msk [vmem:[%s284_s15] sm:$0xff] %vm567_vm4, %v564_v52 }
 0x27e   : > { %883 = shalt.err (!%p880_p0)
}
 0x27f   : > { %s884_s8 = scalar_lea.hbm %s1205_s19, 128  ;;  %s888_s13 = scalar_lea.hbm %s1247_s7, 256 }
 0x280   : > { %p885_p1 = scmp.ne.s32.totalorder %s1205_s19, %s884_s8  ;;  %p889_p4 = scmp.lt.s32.totalorder %s1205_s19, %s1247_s7 }
 0x281   : > { %p890_p7 = scmp.lt.s32.totalorder %s888_s13, %s884_s8 }
 0x282   : > { %p886_p2 = pnand %p885_p1, %p1020_p5 }
 0x283   : > { %p891_p8 = por %p890_p7, %p889_p4 }
 0x284   : > { %p887_p3 = pneg %p886_p2 }
 0x286   : > { %p892_p6 = pnand %p891_p8, %p887_p3 }
 0x288   : > { %895 = shalt.err (!%p892_p6)
}
 0x289   : > { %794 = dma.vmem_to_hbm [thread:$0]  (%p1020_p5), %s584_s16, 128, %s1205_s19, %s570_s20  }
 0x28a PF: > { %p806_p9 = scmp.ge.s32.totalorder %s934_s27, 2  ;;  %s595_s17 = sand.u32 1, %s922_s24  }
 0x28b   : > { %p1251_p10 = scmp.ne.s32.totalorder %s1249_s12, 0  ;;  %s596_s18 = scalar_lea.sflag [#allocation4], %s595_s17 }
 0x28d   : > { %p801_p11 = pnand %p806_p9, %p1251_p10 }
 0x28f   : > { %p802_p12 = pneg %p801_p11 }
 0x291   : > { %917 = dma.done.wait (%p802_p12), %s596_s18, 128  }
 0x292   : > { %919 = vsyncadd (%p802_p12), %s596_s18, 4294967168  ;;  %p18_p13 = scmp.ge.s32.totalorder %s1007_s30, 4   ;;  %s1252_s24 = smov %s926_s25 }
 0x293   : > { %s1253_s25 = smov %s930_s26  ;;  %s1254_s26 = smov %s1018_s10 }
 0x294   : > { %s1255_s27 = smov %s1007_s30  ;;  %20 = sbr.rel (!%p18_p13) target bundleno = 4 (0x4), region = 88 }
 0x299   :  { %601 = vsyncpa [#allocation3], 1 }
 0x29a   :  { %603 = vsyncpa [#allocation3 + $0x1], 1 }
 0x29b   :  { %604 = vsyncpa [#allocation4], 1 }
 0x29c   :  { %606 = vsyncpa [#allocation4 + $0x1], 1 }

</bundles_post_ra>
